<compile_context>
chip_gen: v7x
topology: tpu7x:2x2x1
jax: 0.10.0
libtpu: 0.0.40
codegen_flags: <defaults>
</compile_context>

<pallas_src>
import functools

import jax
import jax.numpy as jnp
import numpy as np
from jax.experimental import pallas as pl
from jax.experimental.pallas import tpu as pltpu

LANES = 128   # TPU lane width (last-dim tile)
TM = 512      # output positions (lanes) per grid step


def _round_up(x, m):
    return ((x + m - 1) // m) * m


# ------------------------------ Pallas kernels -------------------------------

def _conv_gemm_stats_kernel(a_ref, w_ref, o_ref, s1_ref, s2_ref):
    """conv tile = W(C8, Kp) @ patches(Kp, TM) on the MXU, f32 accumulation,
    plus fused per-tile BatchNorm partial statistics (VPU/XLU work that hides
    under the GEMM)."""
    a = a_ref[0]                                                   # (Kp, TM) bf16
    acc = jnp.dot(w_ref[...], a, preferred_element_type=jnp.float32)  # (C8, TM) f32
    o_ref[0] = acc
    # Padded K taps and padded M columns are exactly zero -> contribute 0.
    # E[x^2]-E[x]^2 finalization in f32 is fine for normalized activations;
    # for |mean| >> std switch to a shifted sum-of-squares.
    s1_ref[0, 0] = jnp.sum(acc, axis=1, keepdims=True)             # (C8, 1)
    s2_ref[0, 0] = jnp.sum(acc * acc, axis=1, keepdims=True)       # (C8, 1)


def _bn_relu_kernel(x_ref, scale_ref, shift_ref, o_ref):
    """y = relu(x * scale + shift); scale/shift are per-channel (C8, 1)
    sublane vectors, broadcast along lanes."""
    o_ref[0] = jnp.maximum(x_ref[0] * scale_ref[...] + shift_ref[...], 0.0)


# --------------------------------- Wrapper -----------------------------------

@functools.partial(jax.jit, static_argnames=("stride", "padding", "eps"))
def basic_conv3d(x, weight, gamma, beta, *, stride=1, padding=0, eps=1e-3):
    """Conv3d(no bias) + BatchNorm3d(train-mode batch stats, affine) + ReLU.

    x: (N, Cin, D, H, W) f32    weight: (Cout, Cin, kd, kh, kw) f32
    gamma, beta: (Cout,) f32    returns: (N, Cout, Do, Ho, Wo) f32
    """
    N, Cin, D, H, W = x.shape
    Cout, _, kd, kh, kw = weight.shape
    s, p = stride, padding
    Do = (D + 2 * p - kd) // s + 1
    Ho = (H + 2 * p - kh) // s + 1
    Wo = (W + 2 * p - kw) // s + 1
    Mn = Do * Ho * Wo                      # output positions per batch element
    kvol = kd * kh * kw

    # Pad the number of kernel taps so K = Cin * kvol_p is a multiple of 8
    # (sublane alignment) using zero slabs -> no separate pad pass over the
    # patch matrix, and the weight is padded identically so the GEMM is exact.
    kvol_p = kvol
    while (Cin * kvol_p) % 8 != 0:
        kvol_p += 1
    Kp = Cin * kvol_p

    # -------- im2col in bf16, K-major (channels-first) layout --------
    # TODO(synk): replace with per-M-tile DMA of shifted slabs inside the
    # GEMM kernel to avoid materializing the kvol-times-larger patch matrix.
    xp = jnp.pad(x.astype(jnp.bfloat16),
                 ((0, 0), (0, 0), (p, p), (p, p), (p, p)))
    slabs = []
    for kz in range(kd):
        for ky in range(kh):
            for kx in range(kw):
                slabs.append(
                    xp[:, :, kz:kz + Do * s:s, ky:ky + Ho * s:s, kx:kx + Wo * s:s])
    zero_slab = jnp.zeros((N, Cin, Do, Ho, Wo), dtype=jnp.bfloat16)
    slabs.extend([zero_slab] * (kvol_p - kvol))
    # (N, Cin, kvol_p, Do, Ho, Wo) -> (N, Kp, Mn): K on sublanes, M on lanes.
    patches = jnp.stack(slabs, axis=2).reshape(N, Kp, Mn)

    # Pad M (lanes) to a TM multiple.
    tm = min(TM, _round_up(Mn, LANES))
    Mn_p = _round_up(Mn, tm)
    if Mn_p != Mn:
        patches = jnp.pad(patches, ((0, 0), (0, 0), (0, Mn_p - Mn)))
    n_m = Mn_p // tm

    # Weight (Cout, Cin, kd, kh, kw) -> (C8, Kp) bf16, padded with zero taps
    # in exactly the same K order as the patches.
    C8 = _round_up(Cout, 8)
    w2 = weight.astype(jnp.float32).reshape(Cout, Cin, kvol)
    w2 = jnp.pad(w2, ((0, C8 - Cout), (0, 0), (0, kvol_p - kvol)))
    Wmat = w2.reshape(C8, Kp).astype(jnp.bfloat16)

    # -------- conv GEMM + fused BN partial statistics (Pallas) --------
    conv, psum, psq = pl.pallas_call(
        _conv_gemm_stats_kernel,
        out_shape=(
            jax.ShapeDtypeStruct((N, C8, Mn_p), jnp.float32),
            jax.ShapeDtypeStruct((N, n_m, C8, 1), jnp.float32),
            jax.ShapeDtypeStruct((N, n_m, C8, 1), jnp.float32),
        ),
        grid=(N, n_m),
        in_specs=[
            pl.BlockSpec((1, Kp, tm), lambda n, m: (n, 0, m)),
            pl.BlockSpec((C8, Kp), lambda n, m: (0, 0)),   # resident, no re-DMA
        ],
        out_specs=(
            pl.BlockSpec((1, C8, tm), lambda n, m: (n, 0, m)),
            pl.BlockSpec((1, 1, C8, 1), lambda n, m: (n, m, 0, 0)),
            pl.BlockSpec((1, 1, C8, 1), lambda n, m: (n, m, 0, 0)),
        ),
        compiler_params=pltpu.CompilerParams(
            dimension_semantics=("parallel", "parallel")),  # no cross-step state
    )(patches, Wmat)

    # -------- finalize BN statistics (tiny, plain JAX) --------
    M_true = N * Mn
    s1 = jnp.sum(psum, axis=(0, 1, 3))
    s2 = jnp.sum(psq, axis=(0, 1, 3))
    mean = s1 / M_true
    var = s2 / M_true - mean * mean        # biased variance (PyTorch train-mode BN)
    gamma_p = jnp.pad(gamma.astype(jnp.float32), (0, C8 - Cout))
    beta_p = jnp.pad(beta.astype(jnp.float32), (0, C8 - Cout))
    scale_1d = gamma_p * jax.lax.rsqrt(var + eps)
    shift_1d = beta_p - mean * scale_1d
    scale = scale_1d.reshape(C8, 1)
    shift = shift_1d.reshape(C8, 1)

    # -------- BN + ReLU elementwise (Pallas, in place over the conv buffer) ----
    # NOTE: padded M columns become relu(shift) != 0 here; they are sliced off
    # below and the aliased buffer is not reused afterwards.
    y_flat = pl.pallas_call(
        _bn_relu_kernel,
        out_shape=jax.ShapeDtypeStruct((N, C8, Mn_p), jnp.float32),
        grid=(N, n_m),
        in_specs=[
            pl.BlockSpec((1, C8, tm), lambda n, m: (n, 0, m)),
            pl.BlockSpec((C8, 1), lambda n, m: (0, 0)),
            pl.BlockSpec((C8, 1), lambda n, m: (0, 0)),
        ],
        out_specs=pl.BlockSpec((1, C8, tm), lambda n, m: (n, 0, m)),
        input_output_aliases={0: 0},       # reuse conv's HBM buffer
        compiler_params=pltpu.CompilerParams(
            dimension_semantics=("parallel", "parallel")),
    )(conv, scale, shift)

    # Channels-first layout fell out of the GEMM for free: pure reshape,
    # no transpose pass.
    y = y_flat[:, :Cout, :Mn].reshape(N, Cout, Do, Ho, Wo)
    return y


# -------------------------------- Reference ----------------------------------

def _ref_forward(x, weight, gamma, beta, *, stride, padding, eps):
    dn = jax.lax.conv_dimension_numbers(
        x.shape, weight.shape, ("NCDHW", "OIDHW", "NCDHW"))
    conv = jax.lax.conv_general_dilated(
        x, weight, (stride,) * 3, [(padding, padding)] * 3,
        dimension_numbers=dn, precision=jax.lax.Precision.HIGHEST)
    mean = conv.mean(axis=(0, 2, 3, 4), keepdims=True)
    var = conv.var(axis=(0, 2, 3, 4), keepdims=True)
    y = (conv - mean) * jax.lax.rsqrt(var + eps)
    y = y * gamma.reshape(1, -1, 1, 1, 1) + beta.reshape(1, -1, 1, 1, 1)
    return jnp.maximum(y, 0.0)


# ----------------------------------- Main ------------------------------------

if __name__ == "__main__":
    key = jax.random.PRNGKey(0)
    kx, kw_, kg, kb = jax.random.split(key, 4)

    # BasicConv3d(in_planes=4, out_planes=8, kernel_size=3, stride=1, padding=1)
    N, Cin, D, H, W = 2, 4, 8, 16, 16
    Cout, k = 8, 3
    stride, padding, eps = 1, 1, 1e-3

    x = jax.random.normal(kx, (N, Cin, D, H, W), dtype=jnp.float32)
    weight = 0.1 * jax.random.normal(kw_, (Cout, Cin, k, k, k), dtype=jnp.float32)
    gamma = 1.0 + 0.1 * jax.random.normal(kg, (Cout,), dtype=jnp.float32)
    beta = 0.1 * jax.random.normal(kb, (Cout,), dtype=jnp.float32)

    y = basic_conv3d(x, weight, gamma, beta, stride=stride, padding=padding, eps=eps)
    y = jax.block_until_ready(y)

    y_ref = _ref_forward(x, weight, gamma, beta, stride=stride, padding=padding, eps=eps)
    # bf16 GEMM operands (f32 accumulation) vs the f32 HIGHEST-precision
    # reference -> ~1e-2-scale differences are expected and accepted.
    np.testing.assert_allclose(np.asarray(y), np.asarray(y_ref), rtol=2e-2, atol=2e-2)

    print("KERNEL_OK")
</pallas_src>

<mosaic_0001>
module attributes {stable_mosaic.version = 11 : i64} {
  func.func @_conv_gemm_stats_kernel(%arg0: i32, %arg1: i32, %arg2: memref<1x112x512xbf16, #tpu.memory_space<vmem>>, %arg3: memref<8x112xbf16, #tpu.memory_space<vmem>>, %arg4: memref<1x8x512xf32, #tpu.memory_space<vmem>>, %arg5: memref<1x1x8x1xf32, #tpu.memory_space<vmem>>, %arg6: memref<1x1x8x1xf32, #tpu.memory_space<vmem>>) attributes {dimension_semantics = [#tpu.dimension_semantics<parallel>, #tpu.dimension_semantics<parallel>], iteration_bounds = array<i64: 2, 4>, scalar_prefetch = 0 : i64, scratch_operands = 0 : i64, tpu.core_type = #tpu.core_type<tc>, window_params = [{transform_indices = @transform_0, window_bounds = array<i64: 1, 112, 512>}, {pipeline_mode = #tpu.pipeline_mode<synchronous>, transform_indices = @transform_1, window_bounds = array<i64: 8, 112>}, {transform_indices = @transform_2, window_bounds = array<i64: 1, 8, 512>}, {transform_indices = @transform_3, window_bounds = array<i64: 1, 1, 8, 1>}, {transform_indices = @transform_4, window_bounds = array<i64: 1, 1, 8, 1>}]} {
    %c0 = arith.constant 0 : index
    %c0_0 = arith.constant 0 : index
    %c0_1 = arith.constant 0 : index
    %0 = vector.load %arg2[%c0, %c0_0, %c0_1] : memref<1x112x512xbf16, #tpu.memory_space<vmem>>, vector<1x112x512xbf16>
    %1 = vector.shape_cast %0 : vector<1x112x512xbf16> to vector<112x512xbf16>
    %c0_2 = arith.constant 0 : index
    %c0_3 = arith.constant 0 : index
    %2 = vector.load %arg3[%c0_2, %c0_3] : memref<8x112xbf16, #tpu.memory_space<vmem>>, vector<8x112xbf16>
    %cst = arith.constant dense<0.000000e+00> : vector<8x512xf32>
    %3 = tpu.matmul %2, %1, %cst {dimension_numbers = #tpu.dot_dimension_numbers<[1], [0], [0], [1], [0, 0, 1, 1], [], []>} : vector<8x112xbf16>, vector<112x512xbf16>, vector<8x512xf32> -> vector<8x512xf32>
    %c0_4 = arith.constant 0 : index
    %c0_5 = arith.constant 0 : index
    %c0_6 = arith.constant 0 : index
    %4 = vector.load %arg4[%c0_4, %c0_5, %c0_6] : memref<1x8x512xf32, #tpu.memory_space<vmem>>, vector<1x8x512xf32>
    %5 = vector.shape_cast %4 : vector<1x8x512xf32> to vector<8x512xf32>
    %6 = vector.shape_cast %3 : vector<8x512xf32> to vector<1x8x512xf32>
    tpu.vector_store %arg4[%c0_4, %c0_5, %c0_6], %6 {strides = array<i32>} : memref<1x8x512xf32, #tpu.memory_space<vmem>>, vector<1x8x512xf32>,
    %cst_7 = arith.constant dense<0.000000e+00> : vector<8xf32>
    %7 = vector.multi_reduction <add>, %3, %cst_7 [1] : vector<8x512xf32> to vector<8xf32>
    %8 = vector.shape_cast %7 : vector<8xf32> to vector<8x1xf32>
    %c0_8 = arith.constant 0 : index
    %c0_9 = arith.constant 0 : index
    %c0_10 = arith.constant 0 : index
    %c0_11 = arith.constant 0 : index
    %9 = vector.load %arg5[%c0_8, %c0_9, %c0_10, %c0_11] : memref<1x1x8x1xf32, #tpu.memory_space<vmem>>, vector<1x1x8x1xf32>
    %10 = vector.shape_cast %9 : vector<1x1x8x1xf32> to vector<8x1xf32>
    %11 = vector.shape_cast %8 : vector<8x1xf32> to vector<1x1x8x1xf32>
    tpu.vector_store %arg5[%c0_8, %c0_9, %c0_10, %c0_11], %11 {strides = array<i32>} : memref<1x1x8x1xf32, #tpu.memory_space<vmem>>, vector<1x1x8x1xf32>,
    %12 = arith.mulf %3, %3 : vector<8x512xf32>
    %cst_12 = arith.constant dense<0.000000e+00> : vector<8xf32>
    %13 = vector.multi_reduction <add>, %12, %cst_12 [1] : vector<8x512xf32> to vector<8xf32>
    %14 = vector.shape_cast %13 : vector<8xf32> to vector<8x1xf32>
    %c0_13 = arith.constant 0 : index
    %c0_14 = arith.constant 0 : index
    %c0_15 = arith.constant 0 : index
    %c0_16 = arith.constant 0 : index
    %15 = vector.load %arg6[%c0_13, %c0_14, %c0_15, %c0_16] : memref<1x1x8x1xf32, #tpu.memory_space<vmem>>, vector<1x1x8x1xf32>
    %16 = vector.shape_cast %15 : vector<1x1x8x1xf32> to vector<8x1xf32>
    %17 = vector.shape_cast %14 : vector<8x1xf32> to vector<1x1x8x1xf32>
    tpu.vector_store %arg6[%c0_13, %c0_14, %c0_15, %c0_16], %17 {strides = array<i32>} : memref<1x1x8x1xf32, #tpu.memory_space<vmem>>, vector<1x1x8x1xf32>,
    return
  }
  func.func @transform_0(%arg0: i32, %arg1: i32) -> (i32, i32, i32) {
    %c0_i32 = arith.constant 0 : i32
    %c0_i32_0 = arith.constant 0 : i32
    return %arg0, %c0_i32, %arg1 : i32, i32, i32
  }
  func.func @transform_1(%arg0: i32, %arg1: i32) -> (i32, i32) {
    %c0_i32 = arith.constant 0 : i32
    %c0_i32_0 = arith.constant 0 : i32
    %c0_i32_1 = arith.constant 0 : i32
    return %c0_i32, %c0_i32_0 : i32, i32
  }
  func.func @transform_2(%arg0: i32, %arg1: i32) -> (i32, i32, i32) {
    %c0_i32 = arith.constant 0 : i32
    %c0_i32_0 = arith.constant 0 : i32
    return %arg0, %c0_i32, %arg1 : i32, i32, i32
  }
  func.func @transform_3(%arg0: i32, %arg1: i32) -> (i32, i32, i32, i32) {
    %c0_i32 = arith.constant 0 : i32
    %c0_i32_0 = arith.constant 0 : i32
    %c0_i32_1 = arith.constant 0 : i32
    return %arg0, %arg1, %c0_i32, %c0_i32_0 : i32, i32, i32, i32
  }
  func.func @transform_4(%arg0: i32, %arg1: i32) -> (i32, i32, i32, i32) {
    %c0_i32 = arith.constant 0 : i32
    %c0_i32_0 = arith.constant 0 : i32
    %c0_i32_1 = arith.constant 0 : i32
    return %arg0, %arg1, %c0_i32, %c0_i32_0 : i32, i32, i32, i32
  }
}

module attributes {stable_mosaic.version = 11 : i64} {
  func.func @_bn_relu_kernel(%arg0: i32, %arg1: i32, %arg2: memref<1x8x512xf32, #tpu.memory_space<vmem>>, %arg3: memref<8x1xf32, #tpu.memory_space<vmem>>, %arg4: memref<8x1xf32, #tpu.memory_space<vmem>>, %arg5: memref<1x8x512xf32, #tpu.memory_space<vmem>>) attributes {dimension_semantics = [#tpu.dimension_semantics<parallel>, #tpu.dimension_semantics<parallel>], iteration_bounds = array<i64: 2, 4>, scalar_prefetch = 0 : i64, scratch_operands = 0 : i64, tpu.core_type = #tpu.core_type<tc>, window_params = [{transform_indices = @transform_0, window_bounds = array<i64: 1, 8, 512>}, {pipeline_mode = #tpu.pipeline_mode<synchronous>, transform_indices = @transform_1, window_bounds = array<i64: 8, 1>}, {pipeline_mode = #tpu.pipeline_mode<synchronous>, transform_indices = @transform_2, window_bounds = array<i64: 8, 1>}, {transform_indices = @transform_3, window_bounds = array<i64: 1, 8, 512>}]} {
    %c0 = arith.constant 0 : index
    %c0_0 = arith.constant 0 : index
    %c0_1 = arith.constant 0 : index
    %0 = vector.load %arg2[%c0, %c0_0, %c0_1] : memref<1x8x512xf32, #tpu.memory_space<vmem>>, vector<1x8x512xf32>
    %1 = vector.shape_cast %0 : vector<1x8x512xf32> to vector<8x512xf32>
    %c0_2 = arith.constant 0 : index
    %c0_3 = arith.constant 0 : index
    %2 = vector.load %arg3[%c0_2, %c0_3] : memref<8x1xf32, #tpu.memory_space<vmem>>, vector<8x1xf32>
    %3 = vector.broadcast %2 : vector<8x1xf32> to vector<8x512xf32>
    %4 = arith.mulf %1, %3 : vector<8x512xf32>
    %c0_4 = arith.constant 0 : index
    %c0_5 = arith.constant 0 : index
    %5 = vector.load %arg4[%c0_4, %c0_5] : memref<8x1xf32, #tpu.memory_space<vmem>>, vector<8x1xf32>
    %6 = vector.broadcast %5 : vector<8x1xf32> to vector<8x512xf32>
    %7 = arith.addf %4, %6 : vector<8x512xf32>
    %cst = arith.constant 0.000000e+00 : f32
    %8 = vector.broadcast %cst : f32 to vector<8x512xf32>
    %9 = arith.maximumf %7, %8 : vector<8x512xf32>
    %c0_6 = arith.constant 0 : index
    %c0_7 = arith.constant 0 : index
    %c0_8 = arith.constant 0 : index
    %10 = vector.load %arg5[%c0_6, %c0_7, %c0_8] : memref<1x8x512xf32, #tpu.memory_space<vmem>>, vector<1x8x512xf32>
    %11 = vector.shape_cast %10 : vector<1x8x512xf32> to vector<8x512xf32>
    %12 = vector.shape_cast %9 : vector<8x512xf32> to vector<1x8x512xf32>
    tpu.vector_store %arg5[%c0_6, %c0_7, %c0_8], %12 {strides = array<i32>} : memref<1x8x512xf32, #tpu.memory_space<vmem>>, vector<1x8x512xf32>,
    return
  }
  func.func @transform_0(%arg0: i32, %arg1: i32) -> (i32, i32, i32) {
    %c0_i32 = arith.constant 0 : i32
    %c0_i32_0 = arith.constant 0 : i32
    return %arg0, %c0_i32, %arg1 : i32, i32, i32
  }
  func.func @transform_1(%arg0: i32, %arg1: i32) -> (i32, i32) {
    %c0_i32 = arith.constant 0 : i32
    %c0_i32_0 = arith.constant 0 : i32
    %c0_i32_1 = arith.constant 0 : i32
    return %c0_i32, %c0_i32_0 : i32, i32
  }
  func.func @transform_2(%arg0: i32, %arg1: i32) -> (i32, i32) {
    %c0_i32 = arith.constant 0 : i32
    %c0_i32_0 = arith.constant 0 : i32
    %c0_i32_1 = arith.constant 0 : i32
    return %c0_i32, %c0_i32_0 : i32, i32
  }
  func.func @transform_3(%arg0: i32, %arg1: i32) -> (i32, i32, i32) {
    %c0_i32 = arith.constant 0 : i32
    %c0_i32_0 = arith.constant 0 : i32
    return %arg0, %c0_i32, %arg1 : i32, i32, i32
  }
}

</mosaic_0001>

<bundles_post_ra>
// kernel: basic_conv3d.2
= control target key start
LH: loop header
LB: loop body
LE: loop exit
PB: predicated region body
PF: predicated region fallthrough
CT: control target
= control target key end

     0   :  { %s1035_s15 = smov 0   ;;  %s1037_s16 = smov 0   ;;  %s1230_s0 = inlined_call_operand.vmem [shape: bf16[2,112,2048], index: 0, kind: input, shape index: {}]   ;;  %s1231_s1 = inlined_call_operand.vmem [shape: bf16[8,112], index: 1, kind: input, shape index: {}]   ;;  %s1232_s2 = inlined_call_operand.vmem [shape: f32[2,8,2048], index: 2, kind: output, shape index: {0}]   ;;  %s1233_s3 = inlined_call_operand.vmem [shape: f32[2,4,8,1], index: 3, kind: output, shape index: {1}]   ;;  %s1234_s4 = inlined_call_operand.vmem [shape: f32[2,4,8,1], index: 4, kind: output, shape index: {2}]  }
   0x1   :  { %s1039_s17 = smov 0   ;;  %s1041_s18 = smov 0  }
   0x2   :  { %s1043_s19 = smov 0   ;;  %s1045_s20 = smov 0  }
   0x3   :  { %s1047_s21 = smov 0  }
   0x4 LB: > { %s24_s22 = sadd.s32 1, %s999_s19  ;;  %s27_s23 = sadd.s32 1, %s1003_s20  ;;  %s1007_s21 = sphi %s1047_s21, %s15_s21   ;;  %s1003_s20 = sphi %s1045_s20, %s1240_s20   ;;  %s999_s19 = sphi %s1043_s19, %s1239_s19   ;;  %s995_s18 = sphi %s1041_s18, %s1238_s18   ;;  %s991_s17 = sphi %s1039_s17, %s1237_s17   ;;  %s987_s16 = sphi %s1037_s16, %s1236_s16   ;;  %s983_s15 = sphi %s1035_s15, %s1235_s15  }
   0x5   : > { %p25_p0 = scmp.ge.s32.totalorder %s24_s22, 4  ;;  %p43_p1 = scmp.ne.s32.totalorder %s987_s16, %s983_s15 }
   0x6   : > { %p44_p2 = scmp.eq.s32.totalorder %s1007_s21, 0  ;;  %s36_s27 = sadd.s32 1, %s987_s16 }
   0x7   : > { %s1242_s22 = smov (%p25_p0, %s24_s22), 0  ;;  %s1244_s23 = smov (!%p25_p0, %s27_s23), %s1003_s20 }
   0x8   : > { %p45_p3 = por %p44_p2, %p43_p1  ;;  %p29_p4 = scmp.ge.s32.totalorder %s1244_s23, 2 }
   0x9   : > { %s32_s24 = ssub.s32 %s999_s19, %s1242_s22  ;;  %p808_p6 = scmp.ge.s32.totalorder %s1007_s21, 8 }
   0xa   : > { %s1246_s23 = smov (%p29_p4, %s1244_s23), 0 }
   0xb   : > { %s31_s25 = ssub.s32 %s1003_s20, %s1246_s23  ;;  %177 = sbr.rel (%p808_p6) target bundleno = 40 (0x28), region = 20 }
   0xc   : > { %s33_s26 = sor.u32 %s32_s24, %s31_s25 }
   0xd   : > { %p34_p5 = scmp.eq.s32.totalorder %s33_s26, 0 }
   0xf   : > { %s1086_s28 = scalar_select %p34_p5, %s987_s16, %s36_s27  }
  0x12   : > { %180 = sbr.rel (!%p45_p3) target bundleno = 40 (0x28), region = 24  ;;  %s182_s29 = sand.u32 (%p45_p3), 1, %s987_s16  }
  0x13   : > { %s851_s30 = smul.u32 (%p45_p3), 224, %s182_s29  ;;  %s809_s5 = sshll.u32 (%p45_p3), %s999_s19, 2 }
  0x14   : > { %s852_s6 = smul.u32 (%p45_p3), 224, %s1003_s20 }
  0x15   : > { %s1100_s12 = scalar_lea.vmem (%p45_p3), [#allocation2], %s851_s30 }
  0x16   : > { %s187_s7 = sadd.s32 (%p45_p3), %s852_s6, %s809_s5 }
  0x17   : > { %s810_s8 = sshll.u32 (%p45_p3), %s187_s7, 2 }
  0x18   : > { %s1095_s11 = scalar_lea.vmem (%p45_p3), %s1230_s0, %s810_s8 }
  0x19   : > { %v202_v0 = vld [vmem:[%s1095_s11] sm:$0xff]  ;;  %v204_v1 = vld [vmem:[%s1095_s11 + $0x8] sm:$0xff] }
  0x1a   : > { %v206_v2 = vld [vmem:[%s1095_s11 + $0x40] sm:$0xff]  ;;  %203 = vst [vmem:[%s1100_s12] sm:$0xff] %v202_v0  ;;  %205 = vst [vmem:[%s1100_s12 + $0x8] sm:$0xff] %v204_v1  ;;  %v208_v3 = vld [vmem:[%s1095_s11 + $0x48] sm:$0xff] }
  0x1b   : > { %207 = vst [vmem:[%s1100_s12 + $0x10] sm:$0xff] %v206_v2  ;;  %v210_v4 = vld [vmem:[%s1095_s11 + $0x80] sm:$0xff]  ;;  %v212_v5 = vld [vmem:[%s1095_s11 + $0x88] sm:$0xff]  ;;  %209 = vst [vmem:[%s1100_s12 + $0x18] sm:$0xff] %v208_v3 }
  0x1c   : > { %211 = vst [vmem:[%s1100_s12 + $0x20] sm:$0xff] %v210_v4  ;;  %213 = vst [vmem:[%s1100_s12 + $0x28] sm:$0xff] %v212_v5  ;;  %v214_v6 = vld [vmem:[%s1095_s11 + $0xc0] sm:$0xff]  ;;  %v216_v7 = vld [vmem:[%s1095_s11 + $0xc8] sm:$0xff] }
  0x1d   : > { %v218_v8 = vld [vmem:[%s1095_s11 + $0x100] sm:$0xff]  ;;  %215 = vst [vmem:[%s1100_s12 + $0x30] sm:$0xff] %v214_v6  ;;  %217 = vst [vmem:[%s1100_s12 + $0x38] sm:$0xff] %v216_v7  ;;  %v220_v9 = vld [vmem:[%s1095_s11 + $0x108] sm:$0xff] }
  0x1e   : > { %219 = vst [vmem:[%s1100_s12 + $0x40] sm:$0xff] %v218_v8  ;;  %v222_v10 = vld [vmem:[%s1095_s11 + $0x140] sm:$0xff]  ;;  %v224_v11 = vld [vmem:[%s1095_s11 + $0x148] sm:$0xff]  ;;  %221 = vst [vmem:[%s1100_s12 + $0x48] sm:$0xff] %v220_v9 }
  0x1f   : > { %223 = vst [vmem:[%s1100_s12 + $0x50] sm:$0xff] %v222_v10  ;;  %225 = vst [vmem:[%s1100_s12 + $0x58] sm:$0xff] %v224_v11  ;;  %v226_v12 = vld [vmem:[%s1095_s11 + $0x180] sm:$0xff]  ;;  %v228_v13 = vld [vmem:[%s1095_s11 + $0x188] sm:$0xff] }
  0x20   : > { %v230_v14 = vld [vmem:[%s1095_s11 + $0x1c0] sm:$0xff]  ;;  %227 = vst [vmem:[%s1100_s12 + $0x60] sm:$0xff] %v226_v12  ;;  %229 = vst [vmem:[%s1100_s12 + $0x68] sm:$0xff] %v228_v13  ;;  %v232_v15 = vld [vmem:[%s1095_s11 + $0x1c8] sm:$0xff] }
  0x21   : > { %231 = vst [vmem:[%s1100_s12 + $0x70] sm:$0xff] %v230_v14  ;;  %v234_v16 = vld [vmem:[%s1095_s11 + $0x200] sm:$0xff]  ;;  %v236_v17 = vld [vmem:[%s1095_s11 + $0x208] sm:$0xff]  ;;  %233 = vst [vmem:[%s1100_s12 + $0x78] sm:$0xff] %v232_v15 }
  0x22   : > { %235 = vst [vmem:[%s1100_s12 + $0x80] sm:$0xff] %v234_v16  ;;  %237 = vst [vmem:[%s1100_s12 + $0x88] sm:$0xff] %v236_v17  ;;  %v238_v18 = vld [vmem:[%s1095_s11 + $0x240] sm:$0xff]  ;;  %v240_v19 = vld [vmem:[%s1095_s11 + $0x248] sm:$0xff] }
  0x23   : > { %v242_v20 = vld [vmem:[%s1095_s11 + $0x280] sm:$0xff]  ;;  %239 = vst [vmem:[%s1100_s12 + $0x90] sm:$0xff] %v238_v18  ;;  %241 = vst [vmem:[%s1100_s12 + $0x98] sm:$0xff] %v240_v19  ;;  %v244_v21 = vld [vmem:[%s1095_s11 + $0x288] sm:$0xff] }
  0x24   : > { %243 = vst [vmem:[%s1100_s12 + $0xa0] sm:$0xff] %v242_v20  ;;  %v246_v22 = vld [vmem:[%s1095_s11 + $0x2c0] sm:$0xff]  ;;  %v248_v23 = vld [vmem:[%s1095_s11 + $0x2c8] sm:$0xff]  ;;  %245 = vst [vmem:[%s1100_s12 + $0xa8] sm:$0xff] %v244_v21 }
  0x25   : > { %247 = vst [vmem:[%s1100_s12 + $0xb0] sm:$0xff] %v246_v22  ;;  %249 = vst [vmem:[%s1100_s12 + $0xb8] sm:$0xff] %v248_v23  ;;  %v250_v24 = vld [vmem:[%s1095_s11 + $0x300] sm:$0xff]  ;;  %v252_v25 = vld [vmem:[%s1095_s11 + $0x308] sm:$0xff] }
  0x26   : > { %v254_v26 = vld [vmem:[%s1095_s11 + $0x340] sm:$0xff]  ;;  %251 = vst [vmem:[%s1100_s12 + $0xc0] sm:$0xff] %v250_v24  ;;  %253 = vst [vmem:[%s1100_s12 + $0xc8] sm:$0xff] %v252_v25  ;;  %v256_v27 = vld [vmem:[%s1095_s11 + $0x348] sm:$0xff] }
  0x27   : > { %255 = vst [vmem:[%s1100_s12 + $0xd0] sm:$0xff] %v254_v26  ;;  %257 = vst [vmem:[%s1100_s12 + $0xd8] sm:$0xff] %v256_v27 }
  0x28 PF: > { %p811_p7 = scmp.ge.s32.totalorder %s1007_s21, 1  ;;  %p262_p8 = scmp.lt.s32.totalorder %s1007_s21, 9 }
  0x2a   : > { %p263_p9 = pnand %p811_p7, %p262_p8 }
  0x2b   : > { %s269_s13 = sand.u32 (!%p263_p9), 1, %s983_s15   ;;  %v1009_v28 = vmov (!%p263_p9), 0   ;;  %v370_v57 = vld [vmem:[%s1231_s1] sm:$0xf] (!%p263_p9)  ;;  %vm511_vm0 = vcmask (!%p263_p9), 916480   ;;  %s812_s26 = sshll.u32 (!%p263_p9), %s991_s17, 2 }
  0x2c   : > { %266 = sbr.rel (%p263_p9) target bundleno = 443 (0x1bb), region = 47  ;;  %547 = vmatprep.mubr.bf16.mxu0 (!%p263_p9), %v1009_v28  ;;  %588 = vmatprep.mubr.bf16.mxu1 (!%p263_p9), %v1009_v28  ;;  %p316_p10 = scmp.lt.s32.totalorder (!%p263_p9), %s995_s18, 1  ;;  %vm606_vm1 = vcmask (!%p263_p9), 7168  }
  0x2d   : > { %s853_s14 = smul.u32 (!%p263_p9), 224, %s269_s13  ;;  %p318_p11 = scmp.lt.s32.totalorder (!%p263_p9), %s812_s26, 15 }
  0x2e   : > { %p327_p12 = scmp.lt.s32.totalorder (!%p263_p9), %s991_s17, 3 }
  0x2f   : > { %s1158_s24 = scalar_lea.vmem (!%p263_p9), [#allocation2], %s853_s14 }
  0x30   : > { %v911_v29 = vld [vmem:[%s1158_s24 + $0x4] ss:$16 sps:$4 sm:$0xff] (!%p263_p9)   ;;  %v913_v30 = vld [vmem:[%s1158_s24 + $0xc] ss:$16 sps:$4 sm:$0xff] (!%p263_p9)   ;;  %v915_v31 = vld [vmem:[%s1158_s24] ss:$16 sps:$4 sm:$0xff] (!%p263_p9)  }
  0x31   : > { %515 = vmatprep.subr.bf16.mxu0 (!%p263_p9), %v911_v29  ;;  %v916_v32 = vld [vmem:[%s1158_s24 + $0x8] ss:$16 sps:$4 sm:$0xff] (!%p263_p9)   ;;  %556 = vmatprep.subr.bf16.mxu1 (!%p263_p9), %v913_v30  ;;  %v917_v33 = vld [vmem:[%s1158_s24 + $0x24] ss:$16 sps:$4 sm:$0xff] (!%p263_p9)   ;;  %v919_v34 = vld [vmem:[%s1158_s24 + $0x2c] ss:$16 sps:$4 sm:$0xff] (!%p263_p9)  }
  0x32   : > { %516 = vmatpush1.bf16.msra.mxu0 (!%p263_p9), %v915_v31  ;;  %557 = vmatpush1.bf16.msra.mxu1 (!%p263_p9), %v916_v32  ;;  %v921_v35 = vld [vmem:[%s1158_s24 + $0x20] ss:$16 sps:$4 sm:$0xff] (!%p263_p9)   ;;  %v922_v36 = vld [vmem:[%s1158_s24 + $0x28] ss:$16 sps:$4 sm:$0xff] (!%p263_p9)   ;;  %v923_v37 = vld [vmem:[%s1158_s24 + $0x44] ss:$16 sps:$4 sm:$0xff] (!%p263_p9)  }
  0x33   : > { %517 = vmatprep.subr.bf16.mxu0 %v917_v33  ;;  %558 = vmatprep.subr.bf16.mxu1 %v919_v34  ;;  %v925_v38 = vld [vmem:[%s1158_s24 + $0x4c] ss:$16 sps:$4 sm:$0xff]   ;;  %v927_v39 = vld [vmem:[%s1158_s24 + $0x40] ss:$16 sps:$4 sm:$0xff]   ;;  %v928_v40 = vld [vmem:[%s1158_s24 + $0x48] ss:$16 sps:$4 sm:$0xff]  }
  0x34   : > { %v929_v41 = vld [vmem:[%s1158_s24 + $0x64] ss:$16 sps:$4 sm:$0xff]   ;;  %v931_v42 = vld [vmem:[%s1158_s24 + $0x6c] ss:$16 sps:$4 sm:$0xff]   ;;  %v933_v43 = vld [vmem:[%s1158_s24 + $0x60] ss:$16 sps:$4 sm:$0xff]  }
  0x35   : > { %v934_v44 = vld [vmem:[%s1158_s24 + $0x68] ss:$16 sps:$4 sm:$0xff]   ;;  %v935_v45 = vld [vmem:[%s1158_s24 + $0x84] ss:$16 sps:$4 sm:$0xff]   ;;  %v937_v46 = vld [vmem:[%s1158_s24 + $0x8c] ss:$16 sps:$4 sm:$0xff]  }
  0x36   : > { %518 = vmatpush1.bf16.msra.mxu0 %v921_v35  ;;  %559 = vmatpush1.bf16.msra.mxu1 %v922_v36  ;;  %v939_v47 = vld [vmem:[%s1158_s24 + $0x80] ss:$16 sps:$4 sm:$0xff]   ;;  %v940_v48 = vld [vmem:[%s1158_s24 + $0x88] ss:$16 sps:$4 sm:$0xff]   ;;  %v941_v49 = vld [vmem:[%s1158_s24 + $0xa4] ss:$16 sps:$4 sm:$0xff]  }
  0x37   : > { %519 = vmatprep.subr.bf16.mxu0 %v923_v37  ;;  %560 = vmatprep.subr.bf16.mxu1 %v925_v38  ;;  %v943_v50 = vld [vmem:[%s1158_s24 + $0xac] ss:$16 sps:$4 sm:$0xff]   ;;  %v945_v51 = vld [vmem:[%s1158_s24 + $0xa0] ss:$16 sps:$4 sm:$0xff]   ;;  %v946_v52 = vld [vmem:[%s1158_s24 + $0xa8] ss:$16 sps:$4 sm:$0xff]  }
  0x38   : > { %v947_v53 = vld [vmem:[%s1158_s24 + $0xc4] ss:$16 sps:$4 sm:$0xff]   ;;  %v949_v54 = vld [vmem:[%s1158_s24 + $0xcc] ss:$16 sps:$4 sm:$0xff]   ;;  %v951_v55 = vld [vmem:[%s1158_s24 + $0xc0] ss:$16 sps:$4 sm:$0xff]  }
  0x39   : > { %v952_v56 = vld [vmem:[%s1158_s24 + $0xc8] ss:$16 sps:$4 sm:$0xff]   ;;  %s1248_s18 = smov (!%p316_p10, %s995_s18), 1  ;;  %s1250_s26 = smov (!%p318_p11, %s812_s26), 15 }
  0x3a   : > { %520 = vmatpush1.bf16.msra.mxu0 %v927_v39  ;;  %561 = vmatpush1.bf16.msra.mxu1 %v928_v40  ;;  %s813_s27 = sshll.u32 %s1248_s18, 4  ;;  %s1252_s17 = smov (!%p327_p12, %s991_s17), 3 }
  0x3b   : > { %521 = vmatprep.subr.bf16.mxu0 %v929_v41  ;;  %562 = vmatprep.subr.bf16.mxu1 %v931_v42  ;;  %s321_s29 = sadd.s32 %s813_s27, %s1250_s26  ;;  %s815_s8 = sshll.u32 %s1248_s18, 2 }
  0x3c   : > { %s814_s30 = sshll.u32 %s321_s29, 3  ;;  %s330_s9 = sadd.s32 %s815_s8, %s1252_s17 }
  0x3d   : > { %s323_s7 = scalar_lea.vmem %s1232_s2, %s814_s30  ;;  %s816_s10 = sshll.u32 %s330_s9, 3 }
  0x3e   : > { %522 = vmatpush1.bf16.msra.mxu0 %v933_v43  ;;  %563 = vmatpush1.bf16.msra.mxu1 %v934_v44  ;;  %s332_s13 = scalar_lea.vmem %s1233_s3, %s816_s10  ;;  %s340_s15 = scalar_lea.vmem %s1234_s4, %s816_s10 }
  0x3f   : > { %523 = vmatprep.subr.bf16.mxu0 %v935_v45  ;;  %564 = vmatprep.subr.bf16.mxu1 %v937_v46 }
  0x42   : > { %524 = vmatpush1.bf16.msra.mxu0 %v939_v47  ;;  %565 = vmatpush1.bf16.msra.mxu1 %v940_v48 }
  0x43   : > { %525 = vmatprep.subr.bf16.mxu0 %v941_v49  ;;  %566 = vmatprep.subr.bf16.mxu1 %v943_v50 }
  0x46   : > { %526 = vmatpush1.bf16.msra.mxu0 %v945_v51  ;;  %567 = vmatpush1.bf16.msra.mxu1 %v946_v52 }
  0x47   : > { %527 = vmatprep.subr.bf16.mxu0 %v947_v53  ;;  %568 = vmatprep.subr.bf16.mxu1 %v949_v54 }
  0x4a   : > { %528 = vmatpush1.bf16.msra.mxu0 %v951_v55  ;;  %569 = vmatpush1.bf16.msra.mxu1 %v952_v56 }
  0x4d   : > { %847 = vmatmul.mubr.msk.bf16.vlgmr.msra.gmra.mrb[0].mxu0 %vm511_vm0, %v370_v57  ;;  %848 = vmatmul.mubr.msk.bf16.vlgmr.msra.gmra.mrb[0].mxu1 %vm511_vm0, %v370_v57 }
 0x120   : > { %v549_v58 = vpop.f32.mrb[0].mxu0  ;;  %v590_v59 = vpop.f32.mrb[0].mxu1 }
 0x121   : > { %597 = vst [vmem:[%s323_s7] sm:$0xff] %v549_v58  ;;  %v608_v60 = vmul.f32 %v549_v58, %v549_v58  ;;  %599 = vst [vmem:[%s323_s7 + $0x10] sm:$0xff] %v590_v59  ;;  %v551_v61 = vpop.f32.mrb[1].mxu0  ;;  %v592_v62 = vpop.f32.mrb[1].mxu1  ;;  %v610_v63 = vmul.f32 %v590_v59, %v590_v59 }
 0x122   : > { %598 = vst [vmem:[%s323_s7 + $0x8] sm:$0xff] %v551_v61  ;;  %v601_v0 = vadd.f32 %v551_v61, %v549_v58  ;;  %v609_v1 = vmul.f32 %v551_v61, %v551_v61  ;;  %600 = vst [vmem:[%s323_s7 + $0x18] sm:$0xff] %v592_v62  ;;  %v553_v2 = vpop.f32.mrb[2].mxu0  ;;  %v594_v3 = vpop.f32.mrb[2].mxu1  ;;  %v611_v9 = vmul.f32 %v592_v62, %v592_v62 }
 0x123   : > { %v554_v4 = vpop.f32.mrb[3].mxu0  ;;  %v595_v5 = vpop.f32.mrb[3].mxu1 }
 0x124   : > { %v602_v6 = vadd.f32 %v601_v0, %v590_v59  ;;  %v612_v7 = vadd.f32 %v609_v1, %v608_v60 }
 0x126   : > { %v603_v8 = vadd.f32 %v602_v6, %v592_v62  ;;  %v613_v10 = vadd.f32 %v612_v7, %v610_v63 }
 0x128   : > { %604 = vadd.xlane.f32.xlu0 %v603_v8  ;;  %v614_v11 = vadd.f32 %v613_v10, %v611_v9 }
 0x12c   : > { %615 = vadd.xlane.f32.xlu0 %v614_v11 }
 0x1b5   : > { %v605_v12 = vpop.xlane.xlu0 %604 }
 0x1b6   : > { %607 = vst.msk [vmem:[%s332_s13] sm:$0xff] %vm606_vm1, %v605_v12 }
 0x1b9   : > { %v616_v13 = vpop.xlane.xlu0 %615 }
 0x1ba   : > { %617 = vst.msk [vmem:[%s340_s15] sm:$0xff] %vm606_vm1, %v616_v13 }
 0x1bb PF: > { %s15_s21 = sadd.s32 1, %s1007_s21   ;;  %s1235_s15 = smov %s987_s16 }
 0x1bc   : > { %p12_p13 = scmp.ge.s32.totalorder %s15_s21, 10   ;;  %s1236_s16 = smov %s1086_s28 }
 0x1bd   : > { %s1237_s17 = smov %s999_s19  ;;  %s1238_s18 = smov %s1003_s20 }
 0x1be   : > { %s1239_s19 = smov %s1242_s22  ;;  %s1240_s20 = smov %s1246_s23 }
 0x1bf   :  { %14 = sbr.rel (!%p12_p13) target bundleno = 4 (0x4), region = 110 }

// kernel: basic_conv3d.3
= control target key start
LH: loop header
LB: loop body
LE: loop exit
PB: predicated region body
PF: predicated region fallthrough
CT: control target
= control target key end

     0   :  { %s448_s12 = smov 0   ;;  %s450_s13 = smov 0   ;;  %s505_s0 = inlined_call_operand.vmem [shape: f32[2,8,2048], index: 0, kind: input, shape index: {}, may-alias: {0,3}]   ;;  %s506_s1 = inlined_call_operand.vmem [shape: f32[8,1], index: 1, kind: input, shape index: {}]   ;;  %s507_s2 = inlined_call_operand.vmem [shape: f32[8,1], index: 2, kind: input, shape index: {}]   ;;  %s508_s3 = inlined_call_operand.vmem [shape: f32[2,8,2048], index: 3, kind: output, shape index: {}, may-alias: {0,3}]  }
   0x1   :  { %s452_s14 = smov 0   ;;  %s454_s15 = smov 0  }
   0x2   :  { %s456_s16 = smov 0  }
   0x3 LB: > { %s22_s17 = sadd.s32 1, %s417_s14  ;;  %s25_s18 = sadd.s32 1, %s421_s15  ;;  %s425_s16 = sphi %s456_s16, %s13_s16   ;;  %s421_s15 = sphi %s454_s15, %s512_s15   ;;  %s417_s14 = sphi %s452_s14, %s511_s14   ;;  %s413_s13 = sphi %s450_s13, %s510_s13   ;;  %s409_s12 = sphi %s448_s12, %s509_s12  }
   0x4   : > { %p23_p0 = scmp.ge.s32.totalorder %s22_s17, 4  ;;  %p336_p1 = scmp.ge.s32.totalorder %s425_s16, 1 }
   0x5   : > { %p158_p2 = scmp.lt.s32.totalorder %s425_s16, 9 }
   0x6   : > { %s514_s17 = smov (%p23_p0, %s22_s17), 0  ;;  %s516_s18 = smov (!%p23_p0, %s25_s18), %s421_s15 }
   0x7   : > { %p159_p3 = pnand %p336_p1, %p158_p2  ;;  %p27_p4 = scmp.ge.s32.totalorder %s516_s18, 2 }
   0x8   : > { %v214_v0 = vld [vmem:[%s506_s1] sm:$0xff] (!%p159_p3)  ;;  %v427_v1 = vmov (!%p159_p3), 0   ;;  %s337_s23 = sshll.u32 (!%p159_p3), %s409_s12, 2  ;;  %p191_p5 = scmp.lt.s32.totalorder (!%p159_p3), %s413_s13, 1 }
   0x9   : > { %s518_s18 = smov (%p27_p4, %s516_s18), 0  ;;  %162 = sbr.rel (%p159_p3) target bundleno = 149 (0x95), region = 32 }
   0xa   : > { %386 = vset.pattern.permute.xlu0 (!%p159_p3), %v427_v1  ;;  %v224_v2 = vld [vmem:[%s507_s2] sm:$0xff] (!%p159_p3)  ;;  %p193_p6 = scmp.lt.s32.totalorder (!%p159_p3), %s337_s23, 15 }
   0xb   : > { %217 = vperm.xlu0 (!%p159_p3), %386, %v214_v0  }
   0xf   : > { %227 = vperm.xlu0 (!%p159_p3), %386, %v224_v2  }
  0x10   : > { %s520_s13 = smov (!%p191_p5, %s413_s13), 1  ;;  %s522_s23 = smov (!%p193_p6, %s337_s23), 15 }
  0x11   : > { %s338_s24 = sshll.u32 %s520_s13, 4 }
  0x12   : > { %s196_s25 = sadd.s32 %s338_s24, %s522_s23 }
  0x13   : > { %s339_s26 = sshll.u32 %s196_s25, 3 }
  0x14   : > { %s198_s29 = scalar_lea.vmem %s505_s0, %s339_s26  ;;  %s208_s5 = scalar_lea.vmem %s508_s3, %s339_s26 }
  0x15   : > { %v210_v3 = vld [vmem:[%s198_s29] sm:$0xff]  ;;  %v211_v5 = vld [vmem:[%s198_s29 + $0x8] sm:$0xff]  ;;  %v212_v6 = vld [vmem:[%s198_s29 + $0x10] sm:$0xff] }
  0x16   : > { %v213_v7 = vld [vmem:[%s198_s29 + $0x18] sm:$0xff] }
  0x8a   : > { %v218_v4 = vpop.permute.xlu0 %217 }
  0x8b   : > { %v220_v8 = vmul.f32 %v218_v4, %v210_v3  ;;  %v221_v9 = vmul.f32 %v218_v4, %v211_v5  ;;  %v222_v10 = vmul.f32 %v218_v4, %v212_v6  ;;  %v223_v11 = vmul.f32 %v218_v4, %v213_v7 }
  0x8e   : > { %v228_v12 = vpop.permute.xlu0 %227 }
  0x8f   : > { %v230_v13 = vadd.f32 %v228_v12, %v220_v8  ;;  %v231_v14 = vadd.f32 %v228_v12, %v221_v9  ;;  %v232_v15 = vadd.f32 %v228_v12, %v222_v10  ;;  %v233_v16 = vadd.f32 %v228_v12, %v223_v11 }
  0x91   : > { %v234_v17 = vmax.f32 %v230_v13, 0.0  ;;  %v235_v18 = vmax.f32 %v231_v14, 0.0  ;;  %v236_v19 = vmax.f32 %v232_v15, 0.0  ;;  %v237_v20 = vmax.f32 %v233_v16, 0.0 }
  0x93   : > { %238 = vst [vmem:[%s208_s5] sm:$0xff] %v234_v17  ;;  %239 = vst [vmem:[%s208_s5 + $0x8] sm:$0xff] %v235_v18 }
  0x94   : > { %240 = vst [vmem:[%s208_s5 + $0x10] sm:$0xff] %v236_v19  ;;  %241 = vst [vmem:[%s208_s5 + $0x18] sm:$0xff] %v237_v20 }
  0x95 PF: > { %s13_s16 = sadd.s32 1, %s425_s16   ;;  %s509_s12 = smov %s417_s14 }
  0x96   : > { %p10_p7 = scmp.ge.s32.totalorder %s13_s16, 10   ;;  %s510_s13 = smov %s421_s15 }
  0x97   : > { %s511_s14 = smov %s514_s17  ;;  %s512_s15 = smov %s518_s18 }
  0x98   :  { %12 = sbr.rel (!%p10_p7) target bundleno = 3 (0x3), region = 62 }

</bundles_post_ra>
